<compile_context>
chip_gen: v7x
topology: tpu7x:2x2x1
jax: 0.10.0
libtpu: 0.0.40
codegen_flags: <defaults>
</compile_context>

<pallas_src>
import functools

import numpy as np
import jax
import jax.numpy as jnp
from jax.experimental import pallas as pl
from jax.experimental.pallas import tpu as pltpu


def _round_up(x, m):
    return ((x + m - 1) // m) * m


def _lambda_func_kernel(s_ref, a_ref,
                        w1_ref, b1_ref,
                        w2_ref, b2_ref,
                        w3_ref, b3_ref,
                        w4_ref, b4_ref,
                        out_ref):
    """Fused 4-layer MLP (3 hidden ReLU layers + linear head), one batch tile.

    Weights arrive in bf16; dots run bf16 x bf16 -> f32 on the MXU; bias-add
    and ReLU run in f32 on the VPU.
    """
    # Layer 1: build the state/action concat in VMEM -> one MXU pass.
    x = jnp.concatenate([s_ref[...], a_ref[...]], axis=-1).astype(jnp.bfloat16)
    h = jnp.dot(x, w1_ref[...], preferred_element_type=jnp.float32) + b1_ref[...]
    h = jnp.maximum(h, 0.0)

    h = jnp.dot(h.astype(jnp.bfloat16), w2_ref[...],
                preferred_element_type=jnp.float32) + b2_ref[...]
    h = jnp.maximum(h, 0.0)

    h = jnp.dot(h.astype(jnp.bfloat16), w3_ref[...],
                preferred_element_type=jnp.float32) + b3_ref[...]
    h = jnp.maximum(h, 0.0)

    out = jnp.dot(h.astype(jnp.bfloat16), w4_ref[...],
                  preferred_element_type=jnp.float32) + b4_ref[...]
    out_ref[...] = out.astype(out_ref.dtype)


def prepare_lambda_func_params(params):
    """One-time parameter preprocessing (hoisted out of the per-call path).

    - Zero-pads the last layer to a 128-lane-dense width (lane-dense vst).
    - Casts all weight matrices to bf16 (MXU operands); biases stay f32.
    Returns (prepared_params_tuple, feature_dim).
    """
    w1, b1, w2, b2, w3, b3, w4, b4 = params
    hidden, feature_dim = w4.shape
    f_pad = _round_up(feature_dim, 128)
    if f_pad != feature_dim:
        w4 = jnp.zeros((hidden, f_pad), w4.dtype).at[:, :feature_dim].set(w4)
        b4 = jnp.zeros((1, f_pad), b4.dtype).at[:, :feature_dim].set(b4)
    prepared = (
        w1.astype(jnp.bfloat16), b1.astype(jnp.float32),
        w2.astype(jnp.bfloat16), b2.astype(jnp.float32),
        w3.astype(jnp.bfloat16), b3.astype(jnp.float32),
        w4.astype(jnp.bfloat16), b4.astype(jnp.float32),
    )
    return prepared, int(feature_dim)


@functools.partial(jax.jit,
                   static_argnames=("feature_dim", "tile_b", "return_padded"))
def lambda_func_forward(state, action, prepared, *, feature_dim,
                        tile_b=512, return_padded=False):
    """Pallas implementation of LambdaFunc.forward(state, action)."""
    w1, b1, w2, b2, w3, b3, w4, b4 = prepared

    B, state_dim = state.shape
    action_dim = action.shape[1]
    in_dim = state_dim + action_dim
    hidden = w2.shape[0]
    f_pad = w4.shape[1]

    # --- Batch tiling ---
    # 16-row granularity (bf16 sublane tile); cap the tile so the grid has at
    # least two steps when B >= 16 so the "parallel" axis can use both v7x TCs.
    tb = min(tile_b, _round_up(B, 16))
    if B >= 16:
        tb = min(tb, _round_up((B + 1) // 2, 16))
    b_pad = _round_up(B, tb)
    if b_pad != B:
        state = jnp.pad(state, ((0, b_pad - B), (0, 0)))
        action = jnp.pad(action, ((0, b_pad - B), (0, 0)))
    grid = (b_pad // tb,)

    def _tiled(shape):      # activation blocks: tiled along batch
        return pl.BlockSpec(shape, lambda i: (i, 0))

    def _resident(shape):   # weights/biases: same block every grid step
        # NOTE: at hidden >> 256, consider pipeline_mode=pl.Buffered(1) here
        # (or re-derive the VMEM budget for v7x's 64 MiB).
        return pl.BlockSpec(shape, lambda i: (0, 0))

    in_arrays = (state, action, w1, b1, w2, b2, w3, b3, w4, b4)
    in_specs = [
        _tiled((tb, state_dim)),
        _tiled((tb, action_dim)),
        _resident(w1.shape), _resident(b1.shape),
        _resident(w2.shape), _resident(b2.shape),
        _resident(w3.shape), _resident(b3.shape),
        _resident(w4.shape), _resident(b4.shape),
    ]
    out_spec = _tiled((tb, f_pad))
    out_struct = jax.ShapeDtypeStruct((b_pad, f_pad), jnp.float32)

    flops = 2 * b_pad * (in_dim * hidden
                         + 2 * hidden * hidden
                         + hidden * f_pad)
    weight_bytes = int(2 * (w1.size + w2.size + w3.size + w4.size)
                       + 4 * (b1.size + b2.size + b3.size + b4.size))
    bytes_accessed = (4 * b_pad * in_dim      # f32 inputs
                      + weight_bytes          # bf16 weights + f32 biases
                      + 4 * b_pad * f_pad)    # f32 output

    out_padded = pl.pallas_call(
        _lambda_func_kernel,
        out_shape=out_struct,
        grid=grid,
        in_specs=in_specs,
        out_specs=out_spec,
        compiler_params=pltpu.CompilerParams(
            dimension_semantics=("parallel",)),
        cost_estimate=pl.CostEstimate(
            flops=flops, transcendentals=0, bytes_accessed=bytes_accessed),
    )(*in_arrays)

    if return_padded:
        # Consumers that know the valid extents (B, feature_dim) can take the
        # lane-dense padded slab directly and skip the extra HBM pass.
        return out_padded, out_padded

    out = out_padded[:B, :feature_dim]
    # The module returns the same tensor twice; no need for a second store.
    return out, out


def init_lambda_func_params(key, state_dim, action_dim, feature_dim,
                            hidden_size=256):
    """Deterministic PyTorch-style (uniform +/- 1/sqrt(fan_in)) init.

    Weights are stored already transposed: shape [in, out].
    Biases are stored as [1, out] for TPU-friendly broadcasting.
    """
    dims = [
        (state_dim + action_dim, hidden_size),
        (hidden_size, hidden_size),
        (hidden_size, hidden_size),
        (hidden_size, feature_dim),
    ]
    params = []
    for (fan_in, fan_out) in dims:
        key, kw, kb = jax.random.split(key, 3)
        bound = 1.0 / jnp.sqrt(jnp.float32(fan_in))
        w = jax.random.uniform(kw, (fan_in, fan_out), jnp.float32,
                               minval=-bound, maxval=bound)
        b = jax.random.uniform(kb, (1, fan_out), jnp.float32,
                               minval=-bound, maxval=bound)
        params += [w, b]
    return tuple(params)


def _reference_forward_f32(state, action, params):
    """Plain-JAX f32 reference (matches the PyTorch module exactly)."""
    w1, b1, w2, b2, w3, b3, w4, b4 = params
    x = jnp.concatenate((state, action), axis=1)
    h = jnp.maximum(x @ w1 + b1, 0.0)
    h = jnp.maximum(h @ w2 + b2, 0.0)
    h = jnp.maximum(h @ w3 + b3, 0.0)
    out = h @ w4 + b4
    return out


def _reference_forward_bf16(state, action, params):
    """Reference with the same bf16-operand / f32-accumulate arithmetic."""
    w1, b1, w2, b2, w3, b3, w4, b4 = params
    bf = jnp.bfloat16
    x = jnp.concatenate((state, action), axis=1)
    h = jnp.dot(x.astype(bf), w1.astype(bf),
                preferred_element_type=jnp.float32) + b1
    h = jnp.maximum(h, 0.0)
    h = jnp.dot(h.astype(bf), w2.astype(bf),
                preferred_element_type=jnp.float32) + b2
    h = jnp.maximum(h, 0.0)
    h = jnp.dot(h.astype(bf), w3.astype(bf),
                preferred_element_type=jnp.float32) + b3
    h = jnp.maximum(h, 0.0)
    out = jnp.dot(h.astype(bf), w4.astype(bf),
                  preferred_element_type=jnp.float32) + b4
    return out


if __name__ == "__main__":
    # Small synthetic problem: batch=2, state_dim=8, action_dim=4,
    # feature_dim=16, hidden=32.
    B, STATE_DIM, ACTION_DIM, FEATURE_DIM, HIDDEN = 2, 8, 4, 16, 32

    key = jax.random.PRNGKey(0)
    k_state, k_action, k_params = jax.random.split(key, 3)

    state = jax.random.normal(k_state, (B, STATE_DIM), jnp.float32)
    action = jax.random.normal(k_action, (B, ACTION_DIM), jnp.float32)
    params = init_lambda_func_params(k_params, STATE_DIM, ACTION_DIM,
                                     FEATURE_DIM, hidden_size=HIDDEN)

    # One-time param prep (hoisted out of the per-call path).
    prepared, feature_dim = prepare_lambda_func_params(params)

    out1, out2 = lambda_func_forward(state, action, prepared,
                                     feature_dim=feature_dim)
    jax.block_until_ready((out1, out2))

    ref_bf16 = _reference_forward_bf16(state, action, params)
    ref_f32 = _reference_forward_f32(state, action, params)

    assert out1.shape == (B, FEATURE_DIM) and out2.shape == (B, FEATURE_DIM)
    # Tight check against the matching bf16-operand arithmetic.
    assert jnp.allclose(out1, ref_bf16, atol=1e-4, rtol=1e-4), (
        float(jnp.max(jnp.abs(out1 - ref_bf16))))
    # Loose check against the exact f32 PyTorch-equivalent reference
    # (bf16 MXU operands shift results beyond 1e-5, as noted in the review).
    assert jnp.allclose(out1, ref_f32, atol=5e-2, rtol=5e-2), (
        float(jnp.max(jnp.abs(out1 - ref_f32))))
    assert jnp.array_equal(out1, out2)

    print("KERNEL_OK")
</pallas_src>

<mosaic_0001>
module attributes {stable_mosaic.version = 11 : i64} {
  func.func @_lambda_func_kernel(%arg0: i32, %arg1: memref<16x8xf32, #tpu.memory_space<vmem>>, %arg2: memref<16x4xf32, #tpu.memory_space<vmem>>, %arg3: memref<12x32xbf16, #tpu.memory_space<vmem>>, %arg4: memref<1x32xf32, #tpu.memory_space<vmem>>, %arg5: memref<32x32xbf16, #tpu.memory_space<vmem>>, %arg6: memref<1x32xf32, #tpu.memory_space<vmem>>, %arg7: memref<32x32xbf16, #tpu.memory_space<vmem>>, %arg8: memref<1x32xf32, #tpu.memory_space<vmem>>, %arg9: memref<32x128xbf16, #tpu.memory_space<vmem>>, %arg10: memref<1x128xf32, #tpu.memory_space<vmem>>, %arg11: memref<16x128xf32, #tpu.memory_space<vmem>>) attributes {dimension_semantics = [#tpu.dimension_semantics<parallel>], iteration_bounds = array<i64: 1>, scalar_prefetch = 0 : i64, scratch_operands = 0 : i64, tpu.core_type = #tpu.core_type<tc>, window_params = [{transform_indices = @transform_0, window_bounds = array<i64: 16, 8>}, {transform_indices = @transform_1, window_bounds = array<i64: 16, 4>}, {pipeline_mode = #tpu.pipeline_mode<synchronous>, transform_indices = @transform_2, window_bounds = array<i64: 12, 32>}, {pipeline_mode = #tpu.pipeline_mode<synchronous>, transform_indices = @transform_3, window_bounds = array<i64: 1, 32>}, {pipeline_mode = #tpu.pipeline_mode<synchronous>, transform_indices = @transform_4, window_bounds = array<i64: 32, 32>}, {pipeline_mode = #tpu.pipeline_mode<synchronous>, transform_indices = @transform_5, window_bounds = array<i64: 1, 32>}, {pipeline_mode = #tpu.pipeline_mode<synchronous>, transform_indices = @transform_6, window_bounds = array<i64: 32, 32>}, {pipeline_mode = #tpu.pipeline_mode<synchronous>, transform_indices = @transform_7, window_bounds = array<i64: 1, 32>}, {pipeline_mode = #tpu.pipeline_mode<synchronous>, transform_indices = @transform_8, window_bounds = array<i64: 32, 128>}, {pipeline_mode = #tpu.pipeline_mode<synchronous>, transform_indices = @transform_9, window_bounds = array<i64: 1, 128>}, {transform_indices = @transform_10, window_bounds = array<i64: 16, 128>}]} {
    %c0 = arith.constant 0 : index
    %c0_0 = arith.constant 0 : index
    %0 = vector.load %arg1[%c0, %c0_0] : memref<16x8xf32, #tpu.memory_space<vmem>>, vector<16x8xf32>
    %c0_1 = arith.constant 0 : index
    %c0_2 = arith.constant 0 : index
    %1 = vector.load %arg2[%c0_1, %c0_2] : memref<16x4xf32, #tpu.memory_space<vmem>>, vector<16x4xf32>
    %2 = tpu.concatenate %0, %1 in 1 : vector<16x8xf32>, vector<16x4xf32> -> vector<16x12xf32>
    %3 = arith.truncf %2 : vector<16x12xf32> to vector<16x12xbf16>
    %c0_3 = arith.constant 0 : index
    %c0_4 = arith.constant 0 : index
    %4 = vector.load %arg3[%c0_3, %c0_4] : memref<12x32xbf16, #tpu.memory_space<vmem>>, vector<12x32xbf16>
    %cst = arith.constant dense<0.000000e+00> : vector<16x32xf32>
    %5 = tpu.matmul %3, %4, %cst {dimension_numbers = #tpu.dot_dimension_numbers<[1], [0], [0], [1], [0, 0, 1, 1], [], []>} : vector<16x12xbf16>, vector<12x32xbf16>, vector<16x32xf32> -> vector<16x32xf32>
    %c0_5 = arith.constant 0 : index
    %c0_6 = arith.constant 0 : index
    %6 = vector.load %arg4[%c0_5, %c0_6] : memref<1x32xf32, #tpu.memory_space<vmem>>, vector<1x32xf32>
    %7 = vector.broadcast %6 : vector<1x32xf32> to vector<16x32xf32>
    %8 = arith.addf %5, %7 : vector<16x32xf32>
    %cst_7 = arith.constant 0.000000e+00 : f32
    %9 = vector.broadcast %cst_7 : f32 to vector<16x32xf32>
    %10 = arith.maximumf %8, %9 : vector<16x32xf32>
    %11 = arith.truncf %10 : vector<16x32xf32> to vector<16x32xbf16>
    %c0_8 = arith.constant 0 : index
    %c0_9 = arith.constant 0 : index
    %12 = vector.load %arg5[%c0_8, %c0_9] : memref<32x32xbf16, #tpu.memory_space<vmem>>, vector<32x32xbf16>
    %cst_10 = arith.constant dense<0.000000e+00> : vector<16x32xf32>
    %13 = tpu.matmul %11, %12, %cst_10 {dimension_numbers = #tpu.dot_dimension_numbers<[1], [0], [0], [1], [0, 0, 1, 1], [], []>} : vector<16x32xbf16>, vector<32x32xbf16>, vector<16x32xf32> -> vector<16x32xf32>
    %c0_11 = arith.constant 0 : index
    %c0_12 = arith.constant 0 : index
    %14 = vector.load %arg6[%c0_11, %c0_12] : memref<1x32xf32, #tpu.memory_space<vmem>>, vector<1x32xf32>
    %15 = vector.broadcast %14 : vector<1x32xf32> to vector<16x32xf32>
    %16 = arith.addf %13, %15 : vector<16x32xf32>
    %cst_13 = arith.constant 0.000000e+00 : f32
    %17 = vector.broadcast %cst_13 : f32 to vector<16x32xf32>
    %18 = arith.maximumf %16, %17 : vector<16x32xf32>
    %19 = arith.truncf %18 : vector<16x32xf32> to vector<16x32xbf16>
    %c0_14 = arith.constant 0 : index
    %c0_15 = arith.constant 0 : index
    %20 = vector.load %arg7[%c0_14, %c0_15] : memref<32x32xbf16, #tpu.memory_space<vmem>>, vector<32x32xbf16>
    %cst_16 = arith.constant dense<0.000000e+00> : vector<16x32xf32>
    %21 = tpu.matmul %19, %20, %cst_16 {dimension_numbers = #tpu.dot_dimension_numbers<[1], [0], [0], [1], [0, 0, 1, 1], [], []>} : vector<16x32xbf16>, vector<32x32xbf16>, vector<16x32xf32> -> vector<16x32xf32>
    %c0_17 = arith.constant 0 : index
    %c0_18 = arith.constant 0 : index
    %22 = vector.load %arg8[%c0_17, %c0_18] : memref<1x32xf32, #tpu.memory_space<vmem>>, vector<1x32xf32>
    %23 = vector.broadcast %22 : vector<1x32xf32> to vector<16x32xf32>
    %24 = arith.addf %21, %23 : vector<16x32xf32>
    %cst_19 = arith.constant 0.000000e+00 : f32
    %25 = vector.broadcast %cst_19 : f32 to vector<16x32xf32>
    %26 = arith.maximumf %24, %25 : vector<16x32xf32>
    %27 = arith.truncf %26 : vector<16x32xf32> to vector<16x32xbf16>
    %c0_20 = arith.constant 0 : index
    %c0_21 = arith.constant 0 : index
    %28 = vector.load %arg9[%c0_20, %c0_21] : memref<32x128xbf16, #tpu.memory_space<vmem>>, vector<32x128xbf16>
    %cst_22 = arith.constant dense<0.000000e+00> : vector<16x128xf32>
    %29 = tpu.matmul %27, %28, %cst_22 {dimension_numbers = #tpu.dot_dimension_numbers<[1], [0], [0], [1], [0, 0, 1, 1], [], []>} : vector<16x32xbf16>, vector<32x128xbf16>, vector<16x128xf32> -> vector<16x128xf32>
    %c0_23 = arith.constant 0 : index
    %c0_24 = arith.constant 0 : index
    %30 = vector.load %arg10[%c0_23, %c0_24] : memref<1x128xf32, #tpu.memory_space<vmem>>, vector<1x128xf32>
    %31 = vector.broadcast %30 : vector<1x128xf32> to vector<16x128xf32>
    %32 = arith.addf %29, %31 : vector<16x128xf32>
    %c0_25 = arith.constant 0 : index
    %c0_26 = arith.constant 0 : index
    %33 = vector.load %arg11[%c0_25, %c0_26] : memref<16x128xf32, #tpu.memory_space<vmem>>, vector<16x128xf32>
    tpu.vector_store %arg11[%c0_25, %c0_26], %32 {strides = array<i32>} : memref<16x128xf32, #tpu.memory_space<vmem>>, vector<16x128xf32>,
    return
  }
  func.func @transform_0(%arg0: i32) -> (i32, i32) {
    %c0_i32 = arith.constant 0 : i32
    %c0_i32_0 = arith.constant 0 : i32
    return %arg0, %c0_i32 : i32, i32
  }
  func.func @transform_1(%arg0: i32) -> (i32, i32) {
    %c0_i32 = arith.constant 0 : i32
    %c0_i32_0 = arith.constant 0 : i32
    return %arg0, %c0_i32 : i32, i32
  }
  func.func @transform_2(%arg0: i32) -> (i32, i32) {
    %c0_i32 = arith.constant 0 : i32
    %c0_i32_0 = arith.constant 0 : i32
    %c0_i32_1 = arith.constant 0 : i32
    return %c0_i32, %c0_i32_0 : i32, i32
  }
  func.func @transform_3(%arg0: i32) -> (i32, i32) {
    %c0_i32 = arith.constant 0 : i32
    %c0_i32_0 = arith.constant 0 : i32
    %c0_i32_1 = arith.constant 0 : i32
    return %c0_i32, %c0_i32_0 : i32, i32
  }
  func.func @transform_4(%arg0: i32) -> (i32, i32) {
    %c0_i32 = arith.constant 0 : i32
    %c0_i32_0 = arith.constant 0 : i32
    %c0_i32_1 = arith.constant 0 : i32
    return %c0_i32, %c0_i32_0 : i32, i32
  }
  func.func @transform_5(%arg0: i32) -> (i32, i32) {
    %c0_i32 = arith.constant 0 : i32
    %c0_i32_0 = arith.constant 0 : i32
    %c0_i32_1 = arith.constant 0 : i32
    return %c0_i32, %c0_i32_0 : i32, i32
  }
  func.func @transform_6(%arg0: i32) -> (i32, i32) {
    %c0_i32 = arith.constant 0 : i32
    %c0_i32_0 = arith.constant 0 : i32
    %c0_i32_1 = arith.constant 0 : i32
    return %c0_i32, %c0_i32_0 : i32, i32
  }
  func.func @transform_7(%arg0: i32) -> (i32, i32) {
    %c0_i32 = arith.constant 0 : i32
    %c0_i32_0 = arith.constant 0 : i32
    %c0_i32_1 = arith.constant 0 : i32
    return %c0_i32, %c0_i32_0 : i32, i32
  }
  func.func @transform_8(%arg0: i32) -> (i32, i32) {
    %c0_i32 = arith.constant 0 : i32
    %c0_i32_0 = arith.constant 0 : i32
    %c0_i32_1 = arith.constant 0 : i32
    return %c0_i32, %c0_i32_0 : i32, i32
  }
  func.func @transform_9(%arg0: i32) -> (i32, i32) {
    %c0_i32 = arith.constant 0 : i32
    %c0_i32_0 = arith.constant 0 : i32
    %c0_i32_1 = arith.constant 0 : i32
    return %c0_i32, %c0_i32_0 : i32, i32
  }
  func.func @transform_10(%arg0: i32) -> (i32, i32) {
    %c0_i32 = arith.constant 0 : i32
    %c0_i32_0 = arith.constant 0 : i32
    return %arg0, %c0_i32 : i32, i32
  }
}

</mosaic_0001>

<bundles_post_ra>
// kernel: lambda_func_forward.1
= control target key start
LH: loop header
LB: loop body
LE: loop exit
PB: predicated region body
PF: predicated region fallthrough
CT: control target
= control target key end

     0   :  { %15 = vsyncpa [#allocation3], 0  ;;  %s445_s13 = smov [#allocation2]   ;;  %s584_s0 = inlined_call_operand.vmem [shape: f32[16,8], index: 0, kind: input, shape index: {}]   ;;  %s585_s1 = inlined_call_operand.vmem [shape: f32[16,4], index: 1, kind: input, shape index: {}]   ;;  %s586_s2 = inlined_call_operand.hbm [shape: bf16[12,32], index: 2, kind: input, shape index: {}]   ;;  %s587_s3 = inlined_call_operand.vmem [shape: f32[1,32], index: 3, kind: input, shape index: {}]   ;;  %s588_s4 = inlined_call_operand.vmem [shape: bf16[32,32], index: 4, kind: input, shape index: {}]   ;;  %s589_s5 = inlined_call_operand.vmem [shape: f32[1,32], index: 5, kind: input, shape index: {}]   ;;  %s590_s6 = inlined_call_operand.vmem [shape: bf16[32,32], index: 6, kind: input, shape index: {}]   ;;  %s591_s7 = inlined_call_operand.vmem [shape: f32[1,32], index: 7, kind: input, shape index: {}]   ;;  %s592_s8 = inlined_call_operand.vmem [shape: bf16[32,128], index: 8, kind: input, shape index: {}]   ;;  %s593_s9 = inlined_call_operand.vmem [shape: f32[1,128], index: 9, kind: input, shape index: {}]   ;;  %s594_s10 = inlined_call_operand.vmem [shape: f32[16,128], index: 10, kind: output, shape index: {}]  }
   0x1   :  { %s25_s14 = sshll.u32 %s445_s13, 4  ;;  %s421_s17 = scalar_lea.hbm %s586_s2, 128  ;;  %s26_s14 = int_to_ptr.vmem [resolvable:$true] %s25_s14 }
   0x2   :  { %p422_p0 = scmp.ne.s32.totalorder %s586_s2, %s421_s17  ;;  %p425_p1 = scmp.lt.u32.totalorder %s421_s17, %s586_s2 }
   0x4   :  { %p427_p2 = pnand %p425_p1, %p422_p0 }
   0x6   :  { %430 = shalt.err (!%p427_p2)
}
   0x7   :  { %s431_s22 = scalar_lea.vmem %s26_s14, 128  ;;  %p436_p4 = scmp.lt.s32.totalorder %s26_s14, %s26_s14 }
   0x8   :  { %p432_p3 = scmp.ne.s32.totalorder %s26_s14, %s431_s22  ;;  %p437_p5 = scmp.lt.s32.totalorder %s431_s22, %s431_s22 }
   0xa   :  { %p438_p6 = por %p437_p5, %p436_p4 }
   0xc   :  { %p439_p7 = pnand %p438_p6, %p432_p3 }
   0xe   :  { %442 = shalt.err (!%p439_p7)
}
   0xf   :  { %s446_s23 = smov 64   ;;  %s447_s24 = smov 4  }
  0x10   :  { %31 = dma.hbm_to_vmem [thread:$0]  %s586_s2, 128, %s26_s14, [#allocation3], %s446_s23, %s446_s23, %s447_s24  }
  0x11   :  { %443 = dma.done.wait [#allocation3], 128  }
  0x12   :  { %444 = vsyncadd [#allocation3], 4294967168  ;;  %v448_v0 = vmov 0.0   ;;  %vm449_vm0 = vmmov 0   ;;  %v52_v1 = vld [vmem:[%s585_s1] sm:$0xff]  ;;  %v53_v2 = vld [vmem:[%s585_s1 + $0x8] sm:$0xff] }
  0x13   :  { %373 = vmatprep.subr.bf16.mxu0 %v448_v0  ;;  %379 = vmatprep.subr.bf16.mxu1 %v448_v0  ;;  %v409_v3 = vpack.i.bf16 %v53_v2, %v52_v1  ;;  %vm84_vm1 = vcmask 1045504   ;;  %v414_v4 = vld [vmem:[#allocation2] sm:$0x3f]   ;;  %s450_s30 = smov 8   ;;  %vm62_vm2 = vcmask 64512   ;;  %v51_v8 = vld [vmem:[%s584_s0 + $0x8] sm:$0xff] }
  0x14   :  { %375 = vmatprep.mubr.msk.bf16.mxu0 %vm449_vm0, %v448_v0  ;;  %383 = vmatprep.mubr.msk.bf16.mxu1 %vm449_vm0, %v448_v0  ;;  %v86_v5 = vsel %vm84_vm1, %v414_v4, 0  ;;  %v50_v7 = vld [vmem:[%s584_s0] sm:$0xff]  ;;  %vm80_vm3 = vcmask 97280   ;;  %v416_v15 = vld [vmem:[%s588_s4 + $0x8] sm:$0xff]   ;;  %vm155_vm4 = vcmask 261120  }
  0x15   :  { %410 = vrot.lane.b32.xlu0 %v409_v3, %s450_s30  ;;  %374 = vmatpush3.bf16.msra.mxu0 %v86_v5  ;;  %v415_v14 = vld [vmem:[%s588_s4] sm:$0xff]   ;;  %v418_v27 = vld [vmem:[%s590_s6 + $0x8] sm:$0xff]  }
  0x16   :  { %387 = vmatprep.subr.bf16.mxu0 %v448_v0  ;;  %380 = vmatpush3.bf16.msra.mxu1 %v415_v14  ;;  %v347_v16 = vld [vmem:[%s587_s3] ss:$0 sm:$0xff]  ;;  %v420_v39 = vld [vmem:[%s592_s8 + $0x8] sm:$0xff]  }
  0x17   :  { %381 = vmatprep.subr.bf16.mxu1 %v448_v0  ;;  %v417_v26 = vld [vmem:[%s590_s6] sm:$0xff]  }
  0x18   :  { %v350_v28 = vld [vmem:[%s589_s5] ss:$0 sm:$0xff] }
  0x19   :  { %v419_v38 = vld [vmem:[%s592_s8] sm:$0xff]  }
  0x1a   :  { %382 = vmatpush3.bf16.msra.mxu1 %v416_v15  ;;  %v354_v40 = vld [vmem:[%s591_s7] ss:$0 sm:$0xff] }
  0x1b   :  { %395 = vmatprep.subr.bf16.mxu1 %v448_v0  ;;  %v358_v50 = vld [vmem:[%s593_s9] ss:$0 sm:$0xff] }
  0x87   :  { %v411_v6 = vpop.permute.xlu0 %410 }
  0x88   :  { %v413_v9 = vunpack.i.h.bf16 %v411_v6  ;;  %v412_v10 = vunpack.i.l.bf16 %v411_v6 }
  0x8a   :  { %v63_v11 = vsel %vm62_vm2, %v50_v7, %v412_v10  ;;  %v64_v12 = vsel %vm62_vm2, %v51_v8, %v413_v9 }
  0x8b   :  { %v65_v13 = vpack.c.bf16 %v64_v12, %v63_v11 }
  0x8d   :  { %376 = vmatmul.mubr.msk.bf16.vlgmr.msra.gmra.mrb[0].mxu0 %vm80_vm3, %v65_v13 }
  0x8e   :  { %391 = vmatprep.mubr.msk.bf16.mxu0 %vm449_vm0, %v448_v0  ;;  %388 = vmatpush3.bf16.msra.mxu0 %v417_v26 }
  0x8f   :  { %389 = vmatprep.subr.bf16.mxu0 %v448_v0 }
  0x92   :  { %390 = vmatpush3.bf16.msra.mxu0 %v418_v27 }
 0x160   :  { %v122_v17 = vpop.f32.mrb[0].mxu0 }
 0x161   :  { %v123_v18 = vadd.f32 %v347_v16, %v122_v17  ;;  %v377_v19 = vpop.f32.mrb[1].mxu0 }
 0x162   :  { %v125_v20 = vpop.f32.mrb[2].mxu0 }
 0x163   :  { %v126_v21 = vadd.f32 %v347_v16, %v125_v20  ;;  %v378_v22 = vpop.f32.mrb[3].mxu0  ;;  %v129_v23 = vmax.f32 %v123_v18, 0.0 }
 0x165   :  { %v130_v24 = vmax.f32 %v126_v21, 0.0 }
 0x167   :  { %v131_v25 = vpack.c.bf16 %v130_v24, %v129_v23 }
 0x169   :  { %384 = vmatmul.mubr.msk.bf16.vlgmr.msra.gmra.mrb[0].mxu1 %vm155_vm4, %v131_v25 }
 0x16a   :  { %399 = vmatprep.mubr.msk.bf16.mxu1 %vm449_vm0, %v448_v0  ;;  %396 = vmatpush3.bf16.msra.mxu1 %v419_v38 }
 0x16b   :  { %397 = vmatprep.subr.bf16.mxu1 %v448_v0 }
 0x16e   :  { %398 = vmatpush3.bf16.msra.mxu1 %v420_v39 }
 0x23c   :  { %v193_v29 = vpop.f32.mrb[0].mxu1 }
 0x23d   :  { %v194_v30 = vadd.f32 %v350_v28, %v193_v29  ;;  %v385_v31 = vpop.f32.mrb[1].mxu1 }
 0x23e   :  { %v196_v32 = vpop.f32.mrb[2].mxu1 }
 0x23f   :  { %v197_v33 = vadd.f32 %v350_v28, %v196_v32  ;;  %v386_v34 = vpop.f32.mrb[3].mxu1  ;;  %v200_v35 = vmax.f32 %v194_v30, 0.0 }
 0x241   :  { %v201_v36 = vmax.f32 %v197_v33, 0.0 }
 0x243   :  { %v202_v37 = vpack.c.bf16 %v201_v36, %v200_v35 }
 0x245   :  { %392 = vmatmul.mubr.msk.bf16.vlgmr.msra.gmra.mrb[4].mxu0 %vm155_vm4, %v202_v37 }
 0x318   :  { %v263_v41 = vpop.f32.mrb[4].mxu0 }
 0x319   :  { %v264_v42 = vadd.f32 %v354_v40, %v263_v41  ;;  %v393_v43 = vpop.f32.mrb[5].mxu0 }
 0x31a   :  { %v266_v44 = vpop.f32.mrb[6].mxu0 }
 0x31b   :  { %v267_v45 = vadd.f32 %v354_v40, %v266_v44  ;;  %v394_v46 = vpop.f32.mrb[7].mxu0  ;;  %v270_v47 = vmax.f32 %v264_v42, 0.0 }
 0x31d   :  { %v271_v48 = vmax.f32 %v267_v45, 0.0 }
 0x31f   :  { %v272_v49 = vpack.c.bf16 %v271_v48, %v270_v47 }
 0x321   :  { %400 = vmatmul.mubr.msk.bf16.vlgmr.msra.gmra.mrb[4].mxu1 %vm155_vm4, %v272_v49 }
 0x3f4   :  { %v333_v51 = vpop.f32.mrb[4].mxu1 }
 0x3f5   :  { %v334_v52 = vadd.f32 %v358_v50, %v333_v51  ;;  %v401_v53 = vpop.f32.mrb[5].mxu1 }
 0x3f6   :  { %v336_v54 = vpop.f32.mrb[6].mxu1 }
 0x3f7   :  { %340 = vst [vmem:[%s594_s10] sm:$0xff] %v334_v52  ;;  %v337_v55 = vadd.f32 %v358_v50, %v336_v54  ;;  %v402_v56 = vpop.f32.mrb[7].mxu1 }
 0x3f9   :  { %341 = vst [vmem:[%s594_s10 + $0x8] sm:$0xff] %v337_v55 }
 0x3fa   :  { %346 = vsyncpa [#allocation3], 1 }

</bundles_post_ra>
